<compile_context>
chip_gen: v5e
topology: v5e:2x2
jax: 0.10.0
libtpu: 0.0.40
codegen_flags: <defaults>
</compile_context>

<pallas_src>
import functools

import jax
import jax.numpy as jnp
from jax.experimental import pallas as pl
from jax.experimental.pallas import tpu as pltpu


def _round_up(x, m):
    return (x + m - 1) // m * m


@functools.lru_cache(maxsize=1)
def _vmem_budget_bytes():
    """Generation-aware VMEM budget: ~85% of physical VMEM, leaving headroom
    for compiler-internal scratch and pipeline buffers (v7x: ~54 of 64 MiB,
    v5e/v6e: ~108 of 128 MiB).  Falls back to a budget that is safe on every
    generation if the hardware query is unavailable."""
    cap = None
    try:  # hardware query only -- a failure here must not break the kernel
        info = pltpu.get_tpu_info()
        for name in ("vmem_capacity_bytes", "vmem_size_bytes", "vmem_bytes"):
            cap = getattr(info, name, None)
            if cap:
                break
    except Exception:
        cap = None
    if not cap:
        cap = 64 * 1024 * 1024  # v7x physical size: safe everywhere
    return int(cap * 0.85)


def _mlp_kernel(x_ref, w1_ref, b1_ref, w2_ref, b2_ref, o_ref, acc_ref):
    k = pl.program_id(1)

    @pl.when(k == 0)
    def _():
        acc_ref[...] = jnp.zeros_like(acc_ref)

    # Layer 1 on this hidden tile: [tb, inp] @ [inp, th] -> [tb, th], MXU with
    # f32 accumulate; bias add + ReLU in f32 on the VPU.
    h = jnp.dot(x_ref[...], w1_ref[...], preferred_element_type=jnp.float32)
    h = jnp.maximum(h + b1_ref[...].astype(jnp.float32), 0.0)

    # Layer 2 partial product accumulated into the resident f32 scratch:
    # [tb, th] @ [th, out] -> [tb, out].
    acc_ref[...] += jnp.dot(h.astype(w2_ref.dtype), w2_ref[...],
                            preferred_element_type=jnp.float32)

    @pl.when(k == pl.num_programs(1) - 1)
    def _():
        o_ref[...] = (acc_ref[...]
                      + b2_ref[...].astype(jnp.float32)).astype(o_ref.dtype)


@functools.partial(jax.jit, static_argnames=("block_b", "tile_hid"))
def _mlp_pallas(x, w1, b1, w2, b2, *, block_b, tile_hid):
    """Runs the fused kernel on already padded / aligned operands."""
    B, inp_p = x.shape
    hid_p = w1.shape[1]
    out_p = w2.shape[1]
    assert hid_p % tile_hid == 0

    nb = pl.cdiv(B, block_b)        # batch never padded; boundary tile masked
    nk = hid_p // tile_hid

    cost = pl.CostEstimate(
        flops=2 * B * (inp_p * hid_p + hid_p * out_p),
        transcendentals=0,
        bytes_accessed=int(x.size * x.dtype.itemsize
                           + w1.size * w1.dtype.itemsize
                           + b1.size * b1.dtype.itemsize
                           + w2.size * w2.dtype.itemsize
                           + b2.size * b2.dtype.itemsize
                           + B * out_p * x.dtype.itemsize),
    )

    return pl.pallas_call(
        _mlp_kernel,
        out_shape=jax.ShapeDtypeStruct((B, out_p), x.dtype),
        grid_spec=pltpu.PrefetchScalarGridSpec(
            num_scalar_prefetch=0,
            grid=(nb, nk),
            in_specs=[
                # activations: tiled over batch, resident across the k axis
                pl.BlockSpec((block_b, inp_p), lambda i, k: (i, 0)),
                # W1 / b1: stream hidden tiles (double-buffered)
                pl.BlockSpec((inp_p, tile_hid), lambda i, k: (0, k)),
                pl.BlockSpec((1, tile_hid), lambda i, k: (0, k)),
                # W2: stream hidden tiles
                pl.BlockSpec((tile_hid, out_p), lambda i, k: (k, 0)),
                # b2: grid-invariant (tiny)
                pl.BlockSpec((1, out_p), lambda i, k: (0, 0)),
            ],
            out_specs=pl.BlockSpec((block_b, out_p), lambda i, k: (i, 0)),
            scratch_shapes=[pltpu.VMEM((block_b, out_p), jnp.float32)],
        ),
        compiler_params=pltpu.CompilerParams(
            # batch tiles independent -> megacore sharding on v7x;
            # hidden axis is a reduction -> arbitrary (and last).
            dimension_semantics=("parallel", "arbitrary"),
            vmem_limit_bytes=_vmem_budget_bytes(),
        ),
        cost_estimate=cost,
    )(x, w1, b1, w2, b2)


class FusedMLP:
    """Fused 2-layer MLP forward:  relu(x @ w1 + b1) @ w2 + b2.

    w1 : [inp_dim, hid_dim], b1 : [1, hid_dim] (or [hid_dim])
    w2 : [hid_dim, out_dim], b2 : [1, out_dim] (or [out_dim])

    Parameters are zero-padded to MXU-friendly shapes ONCE at construction;
    per call only x is (optionally) lane-padded and the result sliced back.
    """

    def __init__(self, w1, b1, w2, b2, *, block_b=None, tile_hid=None):
        inp_dim, hid_dim = w1.shape
        out_dim = w2.shape[1]
        assert w2.shape[0] == hid_dim and b1.size == hid_dim and b2.size == out_dim
        self.inp_dim, self.hid_dim, self.out_dim = inp_dim, hid_dim, out_dim

        w_itemsize = jnp.dtype(w1.dtype).itemsize
        # inp (K of the first matmul) aligns to 128 to keep the per-call x pad
        # minimal; weight-owned dims (hid/out) are padded once here, so use
        # 256 for sub-32-bit dtypes to fill the 256x256 MXUs on v6e/v7x.
        lane_w = 256 if w_itemsize < 4 else 128
        inp_p = _round_up(inp_dim, 128)
        hid_l = _round_up(hid_dim, lane_w)
        out_p = _round_up(out_dim, lane_w)

        budget = _vmem_budget_bytes()
        if tile_hid is None:
            # Double-buffered W1/W2 hidden tiles get at most ~half the VMEM
            # budget; the rest goes to activation tiles.
            per_col = 2 * (inp_p + out_p) * w_itemsize
            tile_hid = (budget // 2) // max(per_col, 1)
            tile_hid = max(lane_w, min(hid_l, tile_hid // lane_w * lane_w))
        self.tile_hid = int(tile_hid)
        hid_p = _round_up(hid_l, self.tile_hid)

        self.inp_p, self.hid_p, self.out_p = inp_p, hid_p, out_p
        self.block_b = block_b
        self._budget = budget
        # Resident parameter bytes (double-buffered hidden tiles + biases).
        self._w_bytes = (2 * (inp_p + out_p) * self.tile_hid * w_itemsize
                         + 2 * 8 * (self.tile_hid + out_p) * w_itemsize)

        # Pad parameters ONCE (zero padding is exact through lin->relu->lin).
        b1 = jnp.asarray(b1).reshape(1, hid_dim)
        b2 = jnp.asarray(b2).reshape(1, out_dim)
        self._w1 = jnp.pad(w1, ((0, inp_p - inp_dim), (0, hid_p - hid_dim)))
        self._b1 = jnp.pad(b1, ((0, 0), (0, hid_p - hid_dim)))
        self._w2 = jnp.pad(w2, ((0, hid_p - hid_dim), (0, out_p - out_dim)))
        self._b2 = jnp.pad(b2, ((0, 0), (0, out_p - out_dim)))

    def _pick_block_b(self, B, x_itemsize):
        if self.block_b is not None:
            return int(self.block_b)
        sub = max(8, 32 // x_itemsize)           # 8 rows f32, 16 rows bf16
        # Per-batch-row VMEM: double-buffered x and out tiles, f32 accumulator
        # scratch, and the f32 h intermediate for one hidden tile (x2 slack).
        per_row = (2 * self.inp_p * x_itemsize
                   + 2 * self.out_p * x_itemsize
                   + self.out_p * 4
                   + 2 * self.tile_hid * 4)
        avail = max(self._budget - self._w_bytes, sub * per_row)
        bb = min(1024, avail // per_row, _round_up(B, sub))
        bb = max(sub, bb // sub * sub)
        # Keep >= 4 batch steps where possible (2 per TensorCore on v7x) so
        # input-prefetch / output-writeback overlap compute.
        min_bb = max(sub, 64)
        while bb > min_bb and pl.cdiv(B, bb) < 4:
            bb = max(min_bb, _round_up(bb // 2, sub))
        return int(bb)

    def __call__(self, x):
        B, inp = x.shape
        assert inp == self.inp_dim
        x_itemsize = jnp.dtype(x.dtype).itemsize
        block_b = self._pick_block_b(B, x_itemsize)
        if self.inp_p != inp:                    # lane-pad x only when ragged
            x = jnp.pad(x, ((0, 0), (0, self.inp_p - inp)))
        y = _mlp_pallas(x, self._w1, self._b1, self._w2, self._b2,
                        block_b=block_b, tile_hid=self.tile_hid)
        if self.out_p != self.out_dim:
            y = y[:, :self.out_dim]
        return y


def init_mlp_params(key, inp_dim, hid_dim, out_dim, dtype=jnp.float32):
    """kaiming_uniform_-style init (nonlinearity='relu': bound=sqrt(6/fan_in)).
    Weights are stored already transposed: [in, out]."""
    k1, k2, k3, k4 = jax.random.split(key, 4)
    bound1 = (6.0 / inp_dim) ** 0.5
    bound2 = (6.0 / hid_dim) ** 0.5
    w1 = jax.random.uniform(k1, (inp_dim, hid_dim), dtype, -bound1, bound1)
    b1 = jax.random.uniform(k2, (1, hid_dim), dtype, -bound1, bound1)
    w2 = jax.random.uniform(k3, (hid_dim, out_dim), dtype, -bound2, bound2)
    b2 = jax.random.uniform(k4, (1, out_dim), dtype, -bound2, bound2)
    return w1, b1, w2, b2


if __name__ == "__main__":
    # Small shapes consistent with MLP(inp_dim, hid_dim, out_dim, num_layers=2).
    # Feature dims are deliberately NOT 128-aligned to exercise padding; the
    # auto-planner picks block_b=64 -> grid=(4, 1) so the batch pipeline (and
    # v7x dual-TC sharding) has work to overlap.
    batch, inp_dim, hid_dim, out_dim = 256, 64, 96, 24

    key = jax.random.PRNGKey(0)
    kx, kp = jax.random.split(key)
    x = jax.random.normal(kx, (batch, inp_dim), jnp.float32)
    w1, b1, w2, b2 = init_mlp_params(kp, inp_dim, hid_dim, out_dim)

    # ---- f32 path ----
    mlp = FusedMLP(w1, b1, w2, b2)
    out = jax.block_until_ready(mlp(x))
    ref = jnp.maximum(x @ w1 + b1, 0.0) @ w2 + b2
    assert out.shape == (batch, out_dim)
    assert jnp.allclose(out, ref, atol=1e-4, rtol=1e-4), \
        float(jnp.max(jnp.abs(out - ref)))

    # ---- bf16 path (recommended on v5e/v6e/v7x): bf16 MXU, f32 accumulate.
    # Note: h is rounded to bf16 before the second matmul (MXU feed); the
    # reference below intentionally matches that convention.
    xb, w1b, b1b, w2b, b2b = (a.astype(jnp.bfloat16)
                              for a in (x, w1, b1, w2, b2))
    mlp_bf = FusedMLP(w1b, b1b, w2b, b2b)
    out_bf = jax.block_until_ready(mlp_bf(xb))
    h_ref = jnp.maximum(
        xb.astype(jnp.float32) @ w1b.astype(jnp.float32)
        + b1b.astype(jnp.float32), 0.0).astype(jnp.bfloat16)
    ref_bf = (h_ref.astype(jnp.float32) @ w2b.astype(jnp.float32)
              + b2b.astype(jnp.float32))
    assert out_bf.dtype == jnp.bfloat16
    assert out_bf.shape == (batch, out_dim)
    assert jnp.allclose(out_bf.astype(jnp.float32), ref_bf, atol=0.1, rtol=0.05)

    print("KERNEL_OK")
</pallas_src>

<mosaic_0001>
module attributes {stable_mosaic.version = 11 : i64} {
  func.func @_mlp_kernel(%arg0: i32, %arg1: i32, %arg2: memref<64x128xf32, #tpu.memory_space<vmem>>, %arg3: memref<128x128xf32, #tpu.memory_space<vmem>>, %arg4: memref<1x128xf32, #tpu.memory_space<vmem>>, %arg5: memref<128x128xf32, #tpu.memory_space<vmem>>, %arg6: memref<1x128xf32, #tpu.memory_space<vmem>>, %arg7: memref<64x128xf32, #tpu.memory_space<vmem>>, %arg8: memref<64x128xf32, #tpu.memory_space<vmem>>) attributes {dimension_semantics = [#tpu.dimension_semantics<parallel>, #tpu.dimension_semantics<arbitrary>], iteration_bounds = array<i64: 4, 1>, scalar_prefetch = 0 : i64, scratch_operands = 1 : i64, tpu.core_type = #tpu.core_type<tc>, window_params = [{transform_indices = @transform_0, window_bounds = array<i64: 64, 128>}, {transform_indices = @transform_1, window_bounds = array<i64: 128, 128>}, {transform_indices = @transform_2, window_bounds = array<i64: 1, 128>}, {transform_indices = @transform_3, window_bounds = array<i64: 128, 128>}, {pipeline_mode = #tpu.pipeline_mode<synchronous>, transform_indices = @transform_4, window_bounds = array<i64: 1, 128>}, {transform_indices = @transform_5, window_bounds = array<i64: 64, 128>}]} {
    %c0_i32 = arith.constant 0 : i32
    %0 = arith.cmpi eq, %arg1, %c0_i32 : i32
    %1 = arith.extui %0 : i1 to i32
    %c0_i32_0 = arith.constant 0 : i32
    %2 = arith.cmpi ne, %1, %c0_i32_0 : i32
    scf.if %2 {
      %cst_16 = arith.constant 0.000000e+00 : f32
      %19 = vector.broadcast %cst_16 : f32 to vector<64x128xf32>
      %c0_17 = arith.constant 0 : index
      %c0_18 = arith.constant 0 : index
      %20 = vector.load %arg8[%c0_17, %c0_18] : memref<64x128xf32, #tpu.memory_space<vmem>>, vector<64x128xf32>
      tpu.vector_store %arg8[%c0_17, %c0_18], %19 {strides = array<i32>} : memref<64x128xf32, #tpu.memory_space<vmem>>, vector<64x128xf32>,
    } else {
    }
    %c0 = arith.constant 0 : index
    %c0_1 = arith.constant 0 : index
    %3 = vector.load %arg2[%c0, %c0_1] : memref<64x128xf32, #tpu.memory_space<vmem>>, vector<64x128xf32>
    %c0_2 = arith.constant 0 : index
    %c0_3 = arith.constant 0 : index
    %4 = vector.load %arg3[%c0_2, %c0_3] : memref<128x128xf32, #tpu.memory_space<vmem>>, vector<128x128xf32>
    %cst = arith.constant dense<0.000000e+00> : vector<64x128xf32>
    %5 = tpu.matmul %3, %4, %cst {dimension_numbers = #tpu.dot_dimension_numbers<[1], [0], [0], [1], [0, 0, 1, 1], [], []>} : vector<64x128xf32>, vector<128x128xf32>, vector<64x128xf32> -> vector<64x128xf32>
    %c0_4 = arith.constant 0 : index
    %c0_5 = arith.constant 0 : index
    %6 = vector.load %arg4[%c0_4, %c0_5] : memref<1x128xf32, #tpu.memory_space<vmem>>, vector<1x128xf32>
    %7 = vector.broadcast %6 : vector<1x128xf32> to vector<64x128xf32>
    %8 = arith.addf %5, %7 : vector<64x128xf32>
    %cst_6 = arith.constant 0.000000e+00 : f32
    %9 = vector.broadcast %cst_6 : f32 to vector<64x128xf32>
    %10 = arith.maximumf %8, %9 : vector<64x128xf32>
    %c0_7 = arith.constant 0 : index
    %c0_8 = arith.constant 0 : index
    %11 = vector.load %arg8[%c0_7, %c0_8] : memref<64x128xf32, #tpu.memory_space<vmem>>, vector<64x128xf32>
    %c0_9 = arith.constant 0 : index
    %c0_10 = arith.constant 0 : index
    %12 = vector.load %arg5[%c0_9, %c0_10] : memref<128x128xf32, #tpu.memory_space<vmem>>, vector<128x128xf32>
    %cst_11 = arith.constant dense<0.000000e+00> : vector<64x128xf32>
    %13 = tpu.matmul %10, %12, %cst_11 {dimension_numbers = #tpu.dot_dimension_numbers<[1], [0], [0], [1], [0, 0, 1, 1], [], []>} : vector<64x128xf32>, vector<128x128xf32>, vector<64x128xf32> -> vector<64x128xf32>
    %14 = arith.addf %11, %13 : vector<64x128xf32>
    %c0_12 = arith.constant 0 : index
    %c0_13 = arith.constant 0 : index
    %15 = vector.load %arg8[%c0_12, %c0_13] : memref<64x128xf32, #tpu.memory_space<vmem>>, vector<64x128xf32>
    tpu.vector_store %arg8[%c0_12, %c0_13], %14 {strides = array<i32>} : memref<64x128xf32, #tpu.memory_space<vmem>>, vector<64x128xf32>,
    %c0_i32_14 = arith.constant 0 : i32
    %16 = arith.cmpi eq, %arg1, %c0_i32_14 : i32
    %17 = arith.extui %16 : i1 to i32
    %c0_i32_15 = arith.constant 0 : i32
    %18 = arith.cmpi ne, %17, %c0_i32_15 : i32
    scf.if %18 {
      %c0_16 = arith.constant 0 : index
      %c0_17 = arith.constant 0 : index
      %19 = vector.load %arg8[%c0_16, %c0_17] : memref<64x128xf32, #tpu.memory_space<vmem>>, vector<64x128xf32>
      %c0_18 = arith.constant 0 : index
      %c0_19 = arith.constant 0 : index
      %20 = vector.load %arg6[%c0_18, %c0_19] : memref<1x128xf32, #tpu.memory_space<vmem>>, vector<1x128xf32>
      %21 = vector.broadcast %20 : vector<1x128xf32> to vector<64x128xf32>
      %22 = arith.addf %19, %21 : vector<64x128xf32>
      %c0_20 = arith.constant 0 : index
      %c0_21 = arith.constant 0 : index
      %23 = vector.load %arg7[%c0_20, %c0_21] : memref<64x128xf32, #tpu.memory_space<vmem>>, vector<64x128xf32>
      tpu.vector_store %arg7[%c0_20, %c0_21], %22 {strides = array<i32>} : memref<64x128xf32, #tpu.memory_space<vmem>>, vector<64x128xf32>,
    } else {
    }
    return
  }
  func.func @transform_0(%arg0: i32, %arg1: i32) -> (i32, i32) {
    %c0_i32 = arith.constant 0 : i32
    %c0_i32_0 = arith.constant 0 : i32
    return %arg0, %c0_i32 : i32, i32
  }
  func.func @transform_1(%arg0: i32, %arg1: i32) -> (i32, i32) {
    %c0_i32 = arith.constant 0 : i32
    %c0_i32_0 = arith.constant 0 : i32
    return %c0_i32, %arg1 : i32, i32
  }
  func.func @transform_2(%arg0: i32, %arg1: i32) -> (i32, i32) {
    %c0_i32 = arith.constant 0 : i32
    %c0_i32_0 = arith.constant 0 : i32
    return %c0_i32, %arg1 : i32, i32
  }
  func.func @transform_3(%arg0: i32, %arg1: i32) -> (i32, i32) {
    %c0_i32 = arith.constant 0 : i32
    %c0_i32_0 = arith.constant 0 : i32
    return %arg1, %c0_i32 : i32, i32
  }
  func.func @transform_4(%arg0: i32, %arg1: i32) -> (i32, i32) {
    %c0_i32 = arith.constant 0 : i32
    %c0_i32_0 = arith.constant 0 : i32
    %c0_i32_1 = arith.constant 0 : i32
    return %c0_i32, %c0_i32_0 : i32, i32
  }
  func.func @transform_5(%arg0: i32, %arg1: i32) -> (i32, i32) {
    %c0_i32 = arith.constant 0 : i32
    %c0_i32_0 = arith.constant 0 : i32
    return %arg0, %c0_i32 : i32, i32
  }
}

</mosaic_0001>

<bundles_post_ra>
// kernel: _mlp_pallas.1
= control target key start
LH: loop header
LB: loop body
LE: loop exit
PB: predicated region body
PF: predicated region fallthrough
CT: control target
= control target key end

     0   :  { %s1185_s0 = inlined_call_operand.hbm [shape: f32[256,128], index: 0, kind: input, shape index: {}]   ;;  %s1186_s1 = inlined_call_operand.hbm [shape: f32[128,128], index: 1, kind: input, shape index: {}]   ;;  %s1187_s2 = inlined_call_operand.vmem [shape: f32[1,128], index: 2, kind: input, shape index: {}]   ;;  %s1188_s3 = inlined_call_operand.hbm [shape: f32[128,128], index: 3, kind: input, shape index: {}]   ;;  %s1189_s4 = inlined_call_operand.vmem [shape: f32[1,128], index: 4, kind: input, shape index: {}]   ;;  %s1190_s5 = inlined_call_operand.hbm [shape: f32[256,128], index: 5, kind: output, shape index: {}]  }
   0x1   :  { %1193 = sst [smem:[#allocation13_spill]] %s1186_s1 }
   0x2   :  { %1194 = sst [smem:[#allocation14_spill]] %s1188_s3 }
   0x3   :  { %10 = vsyncpa [#allocation4], 0 }
   0x4   :  { %12 = vsyncpa [#allocation4 + $0x1], 0 }
   0x5   :  { %13 = vsyncpa [#allocation7], 0 }
   0x6   :  { %14 = vsyncpa [#allocation5], 0 }
   0x7   :  { %16 = vsyncpa [#allocation5 + $0x1], 0  ;;  %s1012_s18 = smov 0   ;;  %s1014_s19 = smov 0  }
   0x8   :  { %s1016_s20 = smov 0   ;;  %s1018_s21 = smov 0  }
   0x9   :  { %s1020_s22 = smov 0   ;;  %s1022_s23 = smov 0  }
   0xa LB: > { %s655_s24 = sadd.s32 4294967295, %s974_s23   ;;  %s656_s25 = sadd.s32 4294967294, %s974_s23   ;;  %s974_s23 = sphi %s1022_s23, %s22_s23   ;;  %s970_s22 = sphi %s1020_s22, %s1208_s22   ;;  %s966_s21 = sphi %s1018_s21, %s1207_s21   ;;  %s962_s20 = sphi %s1016_s20, %s1206_s20   ;;  %s958_s19 = sphi %s1014_s19, %s1205_s19   ;;  %s954_s18 = sphi %s1012_s18, %s1204_s18  }
   0xb   : > { %p54_p0 = scmp.ne.s32.totalorder %s958_s19, %s954_s18  ;;  %p1048_p1 = scmp.eq.s32.totalorder %s655_s24, 0 }
   0xc   : > { %p183_p2 = scmp.eq.s32.totalorder %s656_s25, 3  ;;  %p657_p4 = scmp.ge.s32.totalorder %s974_s23, 1 }
   0xd   : > { %p1054_p3 = por %p1048_p1, %p54_p0  ;;  %p190_p6 = scmp.lt.s32.totalorder %s974_s23, 5 }
   0xe   : > { %p1059_p5 = por %p183_p2, %p54_p0  ;;  %s1198_s1 = sld [smem:[#allocation13_spill]] }
   0xf   : > { %p1067_p7 = pnand %p657_p4, %p190_p6  ;;  %s976_s8 = smov [#allocation6]  }
  0x10   : > { %s205_s9 = sshll.u32 %s976_s8, 4  ;;  %s1200_s3 = sld [smem:[#allocation14_spill]]  ;;  %s206_s9 = int_to_ptr.vmem [resolvable:$true] %s205_s9 }
  0x11   : > { %p721_p8 = pneg %p1067_p7  ;;  %s1191_s13 = smov 128  }
  0x12   : > { %s1192_s14 = smov 8   ;;  %s979_s15 = smov [#allocation8]  }
  0x13   : > { %p722_p9 = pnand %p721_p8, %p1048_p1  ;;  %s228_s16 = sshll.u32 %s979_s15, 4  ;;  %s229_s16 = int_to_ptr.vmem [resolvable:$true] %s228_s16 }
  0x14   : > { %s203_s6 = sshll.u32 %s1198_s1, 4  ;;  %p177_p10 = scmp.eq.s32.totalorder %s655_s24, 3  ;;  %s204_s6 = int_to_ptr.hbm [resolvable:$true] %s203_s6 }
  0x15   : > { %724 = dma.hbm_to_vmem [thread:$0]  (!%p722_p9), %s204_s6, 2048, %s206_s9, [#allocation7], %s1191_s13, %s1191_s13, %s1192_s14  }
  0x16   : > { %s226_s12 = sshll.u32 %s1200_s3, 4  ;;  %s34_s17 = sadd.s32 1, %s970_s22  ;;  %s227_s12 = int_to_ptr.hbm [resolvable:$true] %s226_s12 }
  0x17   : > { %727 = dma.hbm_to_vmem [thread:$0]  (!%p722_p9), %s227_s12, 2048, %s229_s16, [#allocation7], %s1191_s13, %s1191_s13, %s1192_s14  }
  0x18   : > { %p36_p11 = scmp.ge.s32.totalorder %s34_s17, 4  ;;  %s41_s25 = sadd.s32 1, %s962_s20 }
  0x19   : > { %p48_p12 = scmp.ne.s32.totalorder %s962_s20, %s958_s19  ;;  %p49_p13 = scmp.eq.s32.totalorder %s974_s23, 0 }
  0x1a   : > { %s1210_s17 = smov (%p36_p11, %s34_s17), 0  ;;  %p738_p2 = scmp.lt.s32.totalorder %s974_s23, 4 }
  0x1b   : > { %p1093_p0 = por %p177_p10, %p48_p12  ;;  %s38_s30 = ssub.s32 %s970_s22, %s1210_s17 }
  0x1c   : > { %s245_s6 = sand.u32 1, %s962_s20   ;;  %p39_p4 = scmp.eq.s32.totalorder %s38_s30, 0 }
  0x1d   : > { %p50_p6 = por %p49_p13, %p48_p12  ;;  %s662_s8 = sshll.u32 %s245_s6, 6 }
  0x1e   : > { %s675_s24 = sshll.u32 %s970_s22, 6  ;;  %s249_s16 = scalar_lea.vmem [#allocation3], %s662_s8 }
  0x1f   : > { %s1103_s9 = scalar_select %p39_p4, %s962_s20, %s41_s25  }
  0x20   : > { %s254_s12 = scalar_lea.hbm %s1185_s0, %s675_s24  ;;  %s257_s13 = sshll.u32 %s249_s16, 4  ;;  %s258_s13 = int_to_ptr.vmem [resolvable:$true] %s257_s13 }
  0x21   : > { %s255_s15 = sshll.u32 %s254_s12, 4  ;;  %p729_p8 = pnand %p738_p2, %p50_p6  ;;  %s256_s15 = int_to_ptr.hbm [resolvable:$true] %s255_s15 }
  0x22   : > { %s246_s14 = scalar_lea.sflag [#allocation4], %s245_s6  ;;  %s1202_s1 = smov 8  }
  0x23   : > { %s1203_s3 = smov 128   ;;  %269 = sbr.rel (%p1067_p7) target bundleno = 373 (0x175), region = 40 }
  0x24   : > { %731 = dma.hbm_to_vmem [thread:$0]  (!%p729_p8), %s256_s15, 1024, %s258_s13, %s246_s14, %s1203_s3, %s1203_s3, %s1202_s1  }
  0x25   : > { %s1116_s25 = sand.u32 (!%p1067_p7), 1, %s958_s19  }
  0x26   : > { %s666_s30 = sshll.u32 (!%p1067_p7), %s1116_s25, 6  ;;  %s272_s8 = scalar_lea.sflag (!%p1067_p7), [#allocation4], %s1116_s25 }
  0x27   : > { %s1122_s24 = scalar_lea.vmem (!%p1067_p7), [#allocation3], %s666_s30 }
  0x28   : > { %941 = dma.done.wait (%p1054_p3), %s272_s8, 1024  }
  0x29   : > { %943 = vsyncadd (%p1054_p3), %s272_s8, 4294966272 }
  0x2a   : > { %945 = dma.done.wait (%p1048_p1), [#allocation7], 4096  }
  0x2b   : > { %947 = vsyncadd (%p1048_p1), [#allocation7], 4294963200  ;;  %v357_v0 = vld [vmem:[#allocation6 + $0x78] sm:$0xff]  ;;  %v356_v1 = vld [vmem:[#allocation6 + $0x70] sm:$0xff]  ;;  %s315_s7 = scalar_lea.vmem [#allocation9], %s666_s30  ;;  %s676_s13 = sshll.u32 %s966_s21, 6 }
  0x2c   : > { %677 = vmatpush.msra.mxu2 %v357_v0  ;;  %362 = vmatpush.msra.mxu0 %v357_v0  ;;  %v355_v2 = vld [vmem:[#allocation6 + $0x68] sm:$0xff]  ;;  %v354_v3 = vld [vmem:[#allocation6 + $0x60] sm:$0xff]  ;;  %v353_v4 = vld [vmem:[#allocation6 + $0x58] sm:$0xff]  ;;  %s535_s10 = scalar_lea.hbm %s1190_s5, %s676_s13  ;;  %s536_s11 = sshll.u32 %s315_s7, 4  ;;  %s537_s11 = int_to_ptr.vmem [resolvable:$true] %s536_s11 }
  0x2d   : > { %v352_v5 = vld [vmem:[#allocation6 + $0x50] sm:$0xff]  ;;  %v351_v6 = vld [vmem:[#allocation6 + $0x48] sm:$0xff]  ;;  %v350_v7 = vld [vmem:[#allocation6 + $0x40] sm:$0xff]  ;;  %s538_s12 = sshll.u32 %s535_s10, 4  ;;  %s524_s15 = scalar_lea.sflag [#allocation5], %s1116_s25  ;;  %s539_s12 = int_to_ptr.hbm [resolvable:$true] %s538_s12 }
  0x2e   : > { %678 = vmatpush.msra.mxu2 %v356_v1  ;;  %363 = vmatpush.msra.mxu0 %v356_v1  ;;  %v349_v8 = vld [vmem:[#allocation6 + $0x38] sm:$0xff]  ;;  %v348_v9 = vld [vmem:[#allocation6 + $0x30] sm:$0xff]  ;;  %v347_v10 = vld [vmem:[#allocation6 + $0x28] sm:$0xff]  ;;  %s902_s16 = sshra.s32 %s539_s12, 4  ;;  %s903_s16 = int_to_ptr.hbm [resolvable:$true] %s902_s16 }
  0x2f   : > { %v346_v11 = vld [vmem:[#allocation6 + $0x20] sm:$0xff]  ;;  %v345_v12 = vld [vmem:[#allocation6 + $0x18] sm:$0xff]  ;;  %v344_v13 = vld [vmem:[#allocation6 + $0x10] sm:$0xff]  ;;  %s904_s30 = scalar_lea.hbm %s903_s16, 64  ;;  %p909_p9 = scmp.lt.s32.totalorder %s903_s16, %s1190_s5 }
  0x30   : > { %679 = vmatpush.msra.mxu2 %v355_v2  ;;  %364 = vmatpush.msra.mxu0 %v355_v2  ;;  %v434_v14 = vld [vmem:[#allocation8 + $0x78] sm:$0xff]  ;;  %v433_v15 = vld [vmem:[#allocation8 + $0x70] sm:$0xff]  ;;  %v343_v16 = vld [vmem:[#allocation6 + $0x8] sm:$0xff]  ;;  %p905_p1 = scmp.ne.s32.totalorder %s903_s16, %s904_s30 }
  0x31   : > { %693 = vmatpush.msra.mxu3 %v434_v14  ;;  %435 = vmatpush.msra.mxu1 %v434_v14  ;;  %v432_v17 = vld [vmem:[#allocation8 + $0x68] sm:$0xff]  ;;  %v342_v18 = vld [vmem:[#allocation6] sm:$0xff]  ;;  %v430_v22 = vld [vmem:[#allocation8 + $0x58] sm:$0xff] }
  0x32   : > { %680 = vmatpush.msra.mxu2 %v354_v3  ;;  %365 = vmatpush.msra.mxu0 %v354_v3  ;;  %v338_v19 = vld [vmem:[%s1122_s24 + $0x20] sm:$0xff]  ;;  %v429_v23 = vld [vmem:[#allocation8 + $0x50] sm:$0xff]  ;;  %v428_v24 = vld [vmem:[#allocation8 + $0x48] sm:$0xff]  ;;  %p906_p3 = pnand %p905_p1, %p1093_p0 }
  0x33   : > { %694 = vmatpush.msra.mxu3 %v433_v15  ;;  %436 = vmatpush.msra.mxu1 %v433_v15  ;;  %v334_v20 = vld [vmem:[%s1122_s24] sm:$0xff]  ;;  %v339_v25 = vld [vmem:[%s1122_s24 + $0x28] sm:$0xff]  ;;  %v426_v28 = vld [vmem:[#allocation8 + $0x38] sm:$0xff] }
  0x34   : > { %681 = vmatpush.msra.mxu2 %v353_v4  ;;  %366 = vmatpush.msra.mxu0 %v353_v4  ;;  %v431_v21 = vld [vmem:[#allocation8 + $0x60] sm:$0xff]  ;;  %v335_v26 = vld [vmem:[%s1122_s24 + $0x8] sm:$0xff]  ;;  %v425_v29 = vld [vmem:[#allocation8 + $0x30] sm:$0xff]  ;;  %p907_p7 = pneg %p906_p3 }
  0x35   : > { %695 = vmatpush.msra.mxu3 %v432_v17  ;;  %437 = vmatpush.msra.mxu1 %v432_v17  ;;  %v427_v27 = vld [vmem:[#allocation8 + $0x40] sm:$0xff]  ;;  %v424_v30 = vld [vmem:[#allocation8 + $0x28] sm:$0xff]  ;;  %v340_v31 = vld [vmem:[%s1122_s24 + $0x30] sm:$0xff] }
  0x36   : > { %682 = vmatpush.msra.mxu2 %v352_v5  ;;  %367 = vmatpush.msra.mxu0 %v352_v5  ;;  %v336_v32 = vld [vmem:[%s1122_s24 + $0x10] sm:$0xff]  ;;  %v423_v33 = vld [vmem:[#allocation8 + $0x20] sm:$0xff]  ;;  %v422_v34 = vld [vmem:[#allocation8 + $0x18] sm:$0xff] }
  0x37   : > { %696 = vmatpush.msra.mxu3 %v431_v21  ;;  %438 = vmatpush.msra.mxu1 %v431_v21  ;;  %v341_v35 = vld [vmem:[%s1122_s24 + $0x38] sm:$0xff]  ;;  %v421_v37 = vld [vmem:[#allocation8 + $0x10] sm:$0xff]  ;;  %v420_v38 = vld [vmem:[#allocation8 + $0x8] sm:$0xff] }
  0x38   : > { %683 = vmatpush.msra.mxu2 %v351_v6  ;;  %368 = vmatpush.msra.mxu0 %v351_v6  ;;  %v337_v36 = vld [vmem:[%s1122_s24 + $0x18] sm:$0xff]  ;;  %v419_v39 = vld [vmem:[#allocation8] sm:$0xff]  ;;  %s908_s24 = scalar_lea.hbm %s1190_s5, 256 }
  0x39   : > { %697 = vmatpush.msra.mxu3 %v430_v22  ;;  %439 = vmatpush.msra.mxu1 %v430_v22  ;;  %v796_v40 = vld [vmem:[%s1187_s2] ss:$0 sm:$0xff]  ;;  %p910_p10 = scmp.lt.s32.totalorder %s908_s24, %s904_s30 }
  0x3a   : > { %684 = vmatpush.msra.mxu2 %v350_v7  ;;  %369 = vmatpush.msra.mxu0 %v350_v7  ;;  %v797_v1 = vld [vmem:[%s1189_s4] ss:$0 sm:$0xff] }
  0x3b   : > { %698 = vmatpush.msra.mxu3 %v429_v23  ;;  %440 = vmatpush.msra.mxu1 %v429_v23  ;;  %p911_p11 = por %p910_p10, %p909_p9 }
  0x3c   : > { %685 = vmatpush.msra.mxu2 %v349_v8  ;;  %370 = vmatpush.msra.mxu0 %v349_v8 }
  0x3d   : > { %699 = vmatpush.msra.mxu3 %v428_v24  ;;  %441 = vmatpush.msra.mxu1 %v428_v24  ;;  %p912_p12 = pnand %p911_p11, %p907_p7 }
  0x3e   : > { %686 = vmatpush.msra.mxu2 %v348_v9  ;;  %371 = vmatpush.msra.mxu0 %v348_v9 }
  0x3f   : > { %700 = vmatpush.msra.mxu3 %v427_v27  ;;  %442 = vmatpush.msra.mxu1 %v427_v27 }
  0x40   : > { %687 = vmatpush.msra.mxu2 %v347_v10  ;;  %372 = vmatpush.msra.mxu0 %v347_v10 }
  0x41   : > { %701 = vmatpush.msra.mxu3 %v426_v28  ;;  %443 = vmatpush.msra.mxu1 %v426_v28 }
  0x42   : > { %688 = vmatpush.msra.mxu2 %v346_v11  ;;  %373 = vmatpush.msra.mxu0 %v346_v11 }
  0x43   : > { %702 = vmatpush.msra.mxu3 %v425_v29  ;;  %444 = vmatpush.msra.mxu1 %v425_v29 }
  0x44   : > { %689 = vmatpush.msra.mxu2 %v345_v12  ;;  %374 = vmatpush.msra.mxu0 %v345_v12 }
  0x45   : > { %703 = vmatpush.msra.mxu3 %v424_v30  ;;  %445 = vmatpush.msra.mxu1 %v424_v30 }
  0x46   : > { %690 = vmatpush.msra.mxu2 %v344_v13  ;;  %375 = vmatpush.msra.mxu0 %v344_v13 }
  0x47   : > { %704 = vmatpush.msra.mxu3 %v423_v33  ;;  %446 = vmatpush.msra.mxu1 %v423_v33 }
  0x48   : > { %691 = vmatpush.msra.mxu2 %v343_v16  ;;  %376 = vmatpush.msra.mxu0 %v343_v16 }
  0x49   : > { %705 = vmatpush.msra.mxu3 %v422_v34  ;;  %447 = vmatpush.msra.mxu1 %v422_v34 }
  0x4a   : > { %692 = vmatpush.msra.mxu2 %v342_v18  ;;  %377 = vmatpush.msra.mxu0 %v342_v18 }
  0x4b   : > { %390 = vmatmul.f32.vlgmr.msra.gmra.mxu2 %v338_v19  ;;  %378 = vmatmul.f32.vlgmr.msra.gmra.mxu0 %v334_v20 }
  0x4c   : > { %706 = vmatpush.msra.mxu3 %v421_v37  ;;  %448 = vmatpush.msra.mxu1 %v421_v37 }
  0x4e   : > { %707 = vmatpush.msra.mxu3 %v420_v38  ;;  %449 = vmatpush.msra.mxu1 %v420_v38 }
  0x50   : > { %708 = vmatpush.msra.mxu3 %v419_v39  ;;  %450 = vmatpush.msra.mxu1 %v419_v39 }
  0x53   : > { %393 = vmatmul.f32.gmra.mxu2 %v339_v25  ;;  %381 = vmatmul.f32.gmra.mxu0 %v335_v26 }
  0x5b   : > { %396 = vmatmul.f32.gmra.mxu2 %v340_v31  ;;  %384 = vmatmul.f32.gmra.mxu0 %v336_v32 }
  0x63   : > { %399 = vmatmul.f32.gmra.mxu2 %v341_v35  ;;  %387 = vmatmul.f32.gmra.mxu0 %v337_v36 }
  0xc8   : > { %v379_v41 = vpop.f32.mrf.mxu0 }
  0xc9   : > { %v380_v42 = vadd.f32 %v796_v40, %v379_v41 }
  0xcb   : > { %v403_v43 = vmax.f32 %v380_v42, 0.0 }
  0xcd   : > { %451 = vmatmul.f32.vlgmr.msra.gmra.mxu1 %v403_v43 }
  0xce   : > { %v391_v44 = vpop.f32.mrf.mxu2 }
  0xcf   : > { %v392_v45 = vadd.f32 %v796_v40, %v391_v44 }
  0xd0   : > { %v382_v46 = vpop.f32.mrf.mxu0 }
  0xd1   : > { %v407_v47 = vmax.f32 %v392_v45, 0.0  ;;  %v383_v48 = vadd.f32 %v796_v40, %v382_v46 }
  0xd3   : > { %463 = vmatmul.f32.vlgmr.msra.gmra.mxu3 %v407_v47  ;;  %v404_v49 = vmax.f32 %v383_v48, 0.0 }
  0xd5   : > { %454 = vmatmul.f32.gmra.mxu1 %v404_v49 }
  0xd6   : > { %v394_v50 = vpop.f32.mrf.mxu2 }
  0xd7   : > { %v395_v51 = vadd.f32 %v796_v40, %v394_v50 }
  0xd8   : > { %v385_v52 = vpop.f32.mrf.mxu0 }
  0xd9   : > { %v408_v53 = vmax.f32 %v395_v51, 0.0  ;;  %v386_v54 = vadd.f32 %v796_v40, %v385_v52 }
  0xdb   : > { %466 = vmatmul.f32.gmra.mxu3 %v408_v53  ;;  %v405_v55 = vmax.f32 %v386_v54, 0.0 }
  0xdd   : > { %457 = vmatmul.f32.gmra.mxu1 %v405_v55 }
  0xde   : > { %v397_v56 = vpop.f32.mrf.mxu2 }
  0xdf   : > { %v398_v57 = vadd.f32 %v796_v40, %v397_v56 }
  0xe0   : > { %v388_v58 = vpop.f32.mrf.mxu0 }
  0xe1   : > { %v409_v59 = vmax.f32 %v398_v57, 0.0  ;;  %v389_v60 = vadd.f32 %v796_v40, %v388_v58 }
  0xe3   : > { %469 = vmatmul.f32.gmra.mxu3 %v409_v59  ;;  %v406_v61 = vmax.f32 %v389_v60, 0.0 }
  0xe5   : > { %460 = vmatmul.f32.gmra.mxu1 %v406_v61 }
  0xe6   : > { %v400_v62 = vpop.f32.mrf.mxu2 }
  0xe7   : > { %v401_v63 = vadd.f32 %v796_v40, %v400_v62 }
  0xe9   : > { %v410_v0 = vmax.f32 %v401_v63, 0.0 }
  0xeb   : > { %472 = vmatmul.f32.gmra.mxu3 %v410_v0 }
 0x14a   : > { %v452_v2 = vpop.f32.mrf.mxu1 }
 0x14b   : > { %v507_v3 = vadd.f32 %v797_v1, %v452_v2 }
 0x14d   : > { %515 = vst [vmem:[%s315_s7] sm:$0xff] %v507_v3 }
 0x152   : > { %v455_v4 = vpop.f32.mrf.mxu1 }
 0x153   : > { %v508_v5 = vadd.f32 %v797_v1, %v455_v4 }
 0x155   : > { %516 = vst [vmem:[%s315_s7 + $0x8] sm:$0xff] %v508_v5 }
 0x156   : > { %v464_v6 = vpop.f32.mrf.mxu3 }
 0x157   : > { %v511_v7 = vadd.f32 %v797_v1, %v464_v6 }
 0x159   : > { %519 = vst [vmem:[%s315_s7 + $0x20] sm:$0xff] %v511_v7 }
 0x15a   : > { %v458_v8 = vpop.f32.mrf.mxu1 }
 0x15b   : > { %v509_v9 = vadd.f32 %v797_v1, %v458_v8 }
 0x15d   : > { %517 = vst [vmem:[%s315_s7 + $0x10] sm:$0xff] %v509_v9 }
 0x15e   : > { %v467_v10 = vpop.f32.mrf.mxu3 }
 0x15f   : > { %v512_v11 = vadd.f32 %v797_v1, %v467_v10 }
 0x161   : > { %520 = vst [vmem:[%s315_s7 + $0x28] sm:$0xff] %v512_v11 }
 0x162   : > { %v461_v12 = vpop.f32.mrf.mxu1 }
 0x163   : > { %v510_v13 = vadd.f32 %v797_v1, %v461_v12 }
 0x165   : > { %518 = vst [vmem:[%s315_s7 + $0x18] sm:$0xff] %v510_v13 }
 0x166   : > { %v470_v14 = vpop.f32.mrf.mxu3 }
 0x167   : > { %v513_v15 = vadd.f32 %v797_v1, %v470_v14 }
 0x169   : > { %521 = vst [vmem:[%s315_s7 + $0x30] sm:$0xff] %v513_v15 }
 0x16e   : > { %v473_v16 = vpop.f32.mrf.mxu3 }
 0x16f   : > { %v514_v17 = vadd.f32 %v797_v1, %v473_v16 }
 0x171   : > { %522 = vst [vmem:[%s315_s7 + $0x38] sm:$0xff] %v514_v17 }
 0x172   : > { %915 = shalt.err (!%p912_p12)
}
 0x173   : > { %s980_s25 = smov 128   ;;  %s981_s26 = smov 8  }
 0x174   : > { %719 = dma.vmem_to_hbm [thread:$0]  (%p1093_p0), %s537_s11, 1024, %s539_s12, %s524_s15, %s980_s25, %s980_s25, %s981_s26  }
 0x175 PF: > { %p741_p13 = scmp.ge.s32.totalorder %s974_s23, 2  ;;  %s553_s27 = sand.u32 1, %s954_s18  }
 0x176   : > { %s554_s7 = scalar_lea.sflag [#allocation5], %s553_s27 }
 0x177   : > { %p733_p2 = pnand %p741_p13, %p1059_p5 }
 0x179   : > { %p734_p4 = pneg %p733_p2 }
 0x17b   : > { %949 = dma.done.wait (%p734_p4), %s554_s7, 1024  }
 0x17c   : > { %951 = vsyncadd (%p734_p4), %s554_s7, 4294966272  ;;  %s22_s23 = sadd.s32 1, %s974_s23   ;;  %s1204_s18 = smov %s958_s19 }
 0x17d   : > { %p19_p6 = scmp.ge.s32.totalorder %s22_s23, 6   ;;  %s1205_s19 = smov %s962_s20 }
 0x17e   : > { %s1206_s20 = smov %s1103_s9  ;;  %s1207_s21 = smov %s970_s22 }
 0x17f   : > { %s1208_s22 = smov %s1210_s17  ;;  %21 = sbr.rel (!%p19_p6) target bundleno = 10 (0xa), region = 106 }
 0x184   :  { %560 = vsyncpa [#allocation4], 1 }
 0x185   :  { %562 = vsyncpa [#allocation4 + $0x1], 1 }
 0x186   :  { %563 = vsyncpa [#allocation7], 1 }
 0x187   :  { %564 = vsyncpa [#allocation5], 1 }
 0x188   :  { %566 = vsyncpa [#allocation5 + $0x1], 1 }

</bundles_post_ra>
